<compile_context>
chip_gen: v5e
topology: v5e:2x2
jax: 0.10.0
libtpu: 0.0.40
codegen_flags: <defaults>
</compile_context>

<pallas_src>
import jax
import jax.numpy as jnp
from jax.experimental import pallas as pl
from jax.experimental.pallas import tpu as pltpu

IN_DIM = 50
HID_DIM = 64
OUT_DIM = 25


def mlp_kernel(x_ref, w1_ref, b1_ref, w2_ref, b2_ref, o_ref):
    # Hidden layer: Linear(50, 64) + ReLU (accumulate in f32 on the MXU).
    h = jnp.dot(x_ref[...], w1_ref[...], preferred_element_type=jnp.float32)
    h = h + b1_ref[...]                       # b1 is (1, 64), broadcasts over rows
    h = jnp.maximum(h, 0.0)                   # ReLU
    # Output layer: Linear(64, 25) + Sigmoid.
    z = jnp.dot(h.astype(w2_ref.dtype), w2_ref[...],
                preferred_element_type=jnp.float32)
    z = z + b2_ref[...]                       # b2 is (1, 25)
    o_ref[...] = jax.nn.sigmoid(z).astype(o_ref.dtype)


def mlp_forward(x, w1, b1, w2, b2, *, block_batch=512):
    """Full MLP forward. x: [B, 50] -> [B, 25]."""
    B = x.shape[0]
    out_dim = w2.shape[1]

    # Batch tile: multiple of 8 (sublane), no larger than needed, <= block_batch.
    tb = min(block_batch, ((B + 7) // 8) * 8)
    tb = max(8, ((tb + 7) // 8) * 8)
    padded_b = ((B + tb - 1) // tb) * tb
    if padded_b != B:
        x = jnp.pad(x, ((0, padded_b - B), (0, 0)))
    grid = (padded_b // tb,)

    # Advisory cost estimate for XLA's scheduler around the custom call.
    itemsize = jnp.dtype(x.dtype).itemsize
    flops = 2 * padded_b * (IN_DIM * HID_DIM + HID_DIM * out_dim)
    bytes_accessed = (
        padded_b * IN_DIM * itemsize                       # x read
        + padded_b * out_dim * 4                           # out write (f32)
        + w1.size * jnp.dtype(w1.dtype).itemsize
        + b1.size * jnp.dtype(b1.dtype).itemsize
        + w2.size * jnp.dtype(w2.dtype).itemsize
        + b2.size * jnp.dtype(b2.dtype).itemsize
    )
    cost = pl.CostEstimate(flops=flops,
                           transcendentals=padded_b * out_dim,
                           bytes_accessed=bytes_accessed)

    out = pl.pallas_call(
        mlp_kernel,
        out_shape=jax.ShapeDtypeStruct((padded_b, out_dim), jnp.float32),
        grid=grid,
        in_specs=[
            pl.BlockSpec((tb, IN_DIM), lambda i: (i, 0)),        # x  [TB, 50] tile
            pl.BlockSpec((IN_DIM, HID_DIM), lambda i: (0, 0)),   # w1 resident
            pl.BlockSpec((1, HID_DIM), lambda i: (0, 0)),        # b1 resident
            pl.BlockSpec((HID_DIM, out_dim), lambda i: (0, 0)),  # w2 resident
            pl.BlockSpec((1, out_dim), lambda i: (0, 0)),        # b2 resident
        ],
        out_specs=pl.BlockSpec((tb, out_dim), lambda i: (i, 0)),
        compiler_params=pltpu.CompilerParams(
            dimension_semantics=("parallel",),     # shard batch grid over TCs (v7x)
            vmem_limit_bytes=32 * 1024 * 1024,     # safe on v7x's smaller VMEM
        ),
        cost_estimate=cost,
    )(x, w1, b1, w2, b2)
    return out[:B]


def init_params(key):
    # Mimic PyTorch nn.Linear default init: U(-1/sqrt(fan_in), 1/sqrt(fan_in)).
    k1, k2, k3, k4 = jax.random.split(key, 4)
    bound1 = 1.0 / jnp.sqrt(float(IN_DIM))
    bound2 = 1.0 / jnp.sqrt(float(HID_DIM))
    w1 = jax.random.uniform(k1, (IN_DIM, HID_DIM), jnp.float32, -bound1, bound1)
    b1 = jax.random.uniform(k2, (1, HID_DIM), jnp.float32, -bound1, bound1)
    w2 = jax.random.uniform(k3, (HID_DIM, OUT_DIM), jnp.float32, -bound2, bound2)
    b2 = jax.random.uniform(k4, (1, OUT_DIM), jnp.float32, -bound2, bound2)
    return w1, b1, w2, b2


def _reference(x, w1, b1, w2, b2):
    return jax.nn.sigmoid(jnp.maximum(x @ w1 + b1, 0.0) @ w2 + b2)


if __name__ == "__main__":
    key = jax.random.PRNGKey(0)
    kx1, kx2, kp = jax.random.split(key, 3)
    w1, b1, w2, b2 = init_params(kp)

    # Small demo batch (single tile).
    batch = 8
    x = jax.random.normal(kx1, (batch, IN_DIM), jnp.float32)
    out = jax.block_until_ready(mlp_forward(x, w1, b1, w2, b2))
    ref = _reference(x, w1, b1, w2, b2)
    assert out.shape == (batch, OUT_DIM)
    assert jnp.allclose(out, ref, atol=2e-5, rtol=2e-5)

    # Exercise the multi-tile grid path + batch padding (non-multiple of tile).
    batch2 = 130
    x2 = jax.random.normal(kx2, (batch2, IN_DIM), jnp.float32)
    out2 = jax.block_until_ready(mlp_forward(x2, w1, b1, w2, b2, block_batch=32))
    ref2 = _reference(x2, w1, b1, w2, b2)
    assert out2.shape == (batch2, OUT_DIM)
    assert jnp.allclose(out2, ref2, atol=2e-5, rtol=2e-5)

    print("KERNEL_OK")
</pallas_src>

<mosaic_0001>
module attributes {stable_mosaic.version = 11 : i64} {
  func.func @mlp_kernel(%arg0: i32, %arg1: memref<8x50xf32, #tpu.memory_space<vmem>>, %arg2: memref<50x64xf32, #tpu.memory_space<vmem>>, %arg3: memref<1x64xf32, #tpu.memory_space<vmem>>, %arg4: memref<64x25xf32, #tpu.memory_space<vmem>>, %arg5: memref<1x25xf32, #tpu.memory_space<vmem>>, %arg6: memref<8x25xf32, #tpu.memory_space<vmem>>) attributes {dimension_semantics = [#tpu.dimension_semantics<parallel>], iteration_bounds = array<i64: 1>, scalar_prefetch = 0 : i64, scratch_operands = 0 : i64, tpu.core_type = #tpu.core_type<tc>, window_params = [{transform_indices = @transform_0, window_bounds = array<i64: 8, 50>}, {pipeline_mode = #tpu.pipeline_mode<synchronous>, transform_indices = @transform_1, window_bounds = array<i64: 50, 64>}, {pipeline_mode = #tpu.pipeline_mode<synchronous>, transform_indices = @transform_2, window_bounds = array<i64: 1, 64>}, {pipeline_mode = #tpu.pipeline_mode<synchronous>, transform_indices = @transform_3, window_bounds = array<i64: 64, 25>}, {pipeline_mode = #tpu.pipeline_mode<synchronous>, transform_indices = @transform_4, window_bounds = array<i64: 1, 25>}, {transform_indices = @transform_5, window_bounds = array<i64: 8, 25>}]} {
    %c0 = arith.constant 0 : index
    %c0_0 = arith.constant 0 : index
    %0 = vector.load %arg1[%c0, %c0_0] : memref<8x50xf32, #tpu.memory_space<vmem>>, vector<8x50xf32>
    %c0_1 = arith.constant 0 : index
    %c0_2 = arith.constant 0 : index
    %1 = vector.load %arg2[%c0_1, %c0_2] : memref<50x64xf32, #tpu.memory_space<vmem>>, vector<50x64xf32>
    %cst = arith.constant dense<0.000000e+00> : vector<8x64xf32>
    %2 = tpu.matmul %0, %1, %cst {dimension_numbers = #tpu.dot_dimension_numbers<[1], [0], [0], [1], [0, 0, 1, 1], [], []>} : vector<8x50xf32>, vector<50x64xf32>, vector<8x64xf32> -> vector<8x64xf32>
    %c0_3 = arith.constant 0 : index
    %c0_4 = arith.constant 0 : index
    %3 = vector.load %arg3[%c0_3, %c0_4] : memref<1x64xf32, #tpu.memory_space<vmem>>, vector<1x64xf32>
    %4 = vector.broadcast %3 : vector<1x64xf32> to vector<8x64xf32>
    %5 = arith.addf %2, %4 : vector<8x64xf32>
    %cst_5 = arith.constant 0.000000e+00 : f32
    %6 = vector.broadcast %cst_5 : f32 to vector<8x64xf32>
    %7 = arith.maximumf %5, %6 : vector<8x64xf32>
    %c0_6 = arith.constant 0 : index
    %c0_7 = arith.constant 0 : index
    %8 = vector.load %arg4[%c0_6, %c0_7] : memref<64x25xf32, #tpu.memory_space<vmem>>, vector<64x25xf32>
    %cst_8 = arith.constant dense<0.000000e+00> : vector<8x25xf32>
    %9 = tpu.matmul %7, %8, %cst_8 {dimension_numbers = #tpu.dot_dimension_numbers<[1], [0], [0], [1], [0, 0, 1, 1], [], []>} : vector<8x64xf32>, vector<64x25xf32>, vector<8x25xf32> -> vector<8x25xf32>
    %c0_9 = arith.constant 0 : index
    %c0_10 = arith.constant 0 : index
    %10 = vector.load %arg5[%c0_9, %c0_10] : memref<1x25xf32, #tpu.memory_space<vmem>>, vector<1x25xf32>
    %11 = vector.broadcast %10 : vector<1x25xf32> to vector<8x25xf32>
    %12 = arith.addf %9, %11 : vector<8x25xf32>
    %13 = arith.negf %12 : vector<8x25xf32>
    %14 = math.exp %13 : vector<8x25xf32>
    %cst_11 = arith.constant 1.000000e+00 : f32
    %15 = vector.broadcast %cst_11 : f32 to vector<8x25xf32>
    %16 = arith.addf %15, %14 : vector<8x25xf32>
    %17 = arith.divf %15, %16 : vector<8x25xf32>
    %c0_12 = arith.constant 0 : index
    %c0_13 = arith.constant 0 : index
    %18 = vector.load %arg6[%c0_12, %c0_13] : memref<8x25xf32, #tpu.memory_space<vmem>>, vector<8x25xf32>
    tpu.vector_store %arg6[%c0_12, %c0_13], %17 {strides = array<i32>} : memref<8x25xf32, #tpu.memory_space<vmem>>, vector<8x25xf32>,
    return
  }
  func.func @transform_0(%arg0: i32) -> (i32, i32) {
    %c0_i32 = arith.constant 0 : i32
    %c0_i32_0 = arith.constant 0 : i32
    return %arg0, %c0_i32 : i32, i32
  }
  func.func @transform_1(%arg0: i32) -> (i32, i32) {
    %c0_i32 = arith.constant 0 : i32
    %c0_i32_0 = arith.constant 0 : i32
    %c0_i32_1 = arith.constant 0 : i32
    return %c0_i32, %c0_i32_0 : i32, i32
  }
  func.func @transform_2(%arg0: i32) -> (i32, i32) {
    %c0_i32 = arith.constant 0 : i32
    %c0_i32_0 = arith.constant 0 : i32
    %c0_i32_1 = arith.constant 0 : i32
    return %c0_i32, %c0_i32_0 : i32, i32
  }
  func.func @transform_3(%arg0: i32) -> (i32, i32) {
    %c0_i32 = arith.constant 0 : i32
    %c0_i32_0 = arith.constant 0 : i32
    %c0_i32_1 = arith.constant 0 : i32
    return %c0_i32, %c0_i32_0 : i32, i32
  }
  func.func @transform_4(%arg0: i32) -> (i32, i32) {
    %c0_i32 = arith.constant 0 : i32
    %c0_i32_0 = arith.constant 0 : i32
    %c0_i32_1 = arith.constant 0 : i32
    return %c0_i32, %c0_i32_0 : i32, i32
  }
  func.func @transform_5(%arg0: i32) -> (i32, i32) {
    %c0_i32 = arith.constant 0 : i32
    %c0_i32_0 = arith.constant 0 : i32
    return %arg0, %c0_i32 : i32, i32
  }
}

</mosaic_0001>

<bundles_post_ra>
// kernel: tpu_custom_call.1
= control target key start
LH: loop header
LB: loop body
LE: loop exit
PB: predicated region body
PF: predicated region fallthrough
CT: control target
= control target key end

     0   :  { %vm37_vm0 = vcmask 1041408   ;;  %s260_s0 = inlined_call_operand.vmem [shape: f32[8,50], index: 0, kind: input, shape index: {}]   ;;  %s261_s1 = inlined_call_operand.vmem [shape: f32[50,64], index: 1, kind: input, shape index: {}]   ;;  %s262_s2 = inlined_call_operand.vmem [shape: f32[1,64], index: 2, kind: input, shape index: {}]   ;;  %s263_s3 = inlined_call_operand.vmem [shape: f32[64,25], index: 3, kind: input, shape index: {}]   ;;  %s264_s4 = inlined_call_operand.vmem [shape: f32[1,25], index: 4, kind: input, shape index: {}]   ;;  %s265_s5 = inlined_call_operand.hbm [shape: f32[8,25], index: 5, kind: output, shape index: {}]  }
   0x1   :  { %v28_v0 = vld [vmem:[%s261_s1 + $0x30] sm:$0x3]  ;;  %v27_v1 = vld [vmem:[%s261_s1 + $0x28] sm:$0xff]  ;;  %v26_v2 = vld [vmem:[%s261_s1 + $0x20] sm:$0xff] }
   0x2   :  { %135 = vmatpush.msk.msra.mxu0 %vm37_vm0, %v28_v0  ;;  %v69_v3 = vld [vmem:[%s263_s3 + $0x38] sm:$0xff]  ;;  %v68_v4 = vld [vmem:[%s263_s3 + $0x30] sm:$0xff]  ;;  %v67_v6 = vld [vmem:[%s263_s3 + $0x28] sm:$0xff] }
   0x3   :  { %86 = vmatpush.msra.mxu1 %v69_v3  ;;  %v25_v5 = vld [vmem:[%s261_s1 + $0x18] sm:$0xff] }
   0x4   :  { %51 = vmatpush.msra.mxu0 %v27_v1 }
   0x5   :  { %87 = vmatpush.msra.mxu1 %v68_v4 }
   0x6   :  { %52 = vmatpush.msra.mxu0 %v26_v2 }
   0x7   :  { %10 = vsyncpa [#allocation3], 0  ;;  %v24_v7 = vld [vmem:[%s261_s1 + $0x10] sm:$0xff]  ;;  %v66_v8 = vld [vmem:[%s263_s3 + $0x20] sm:$0xff]  ;;  %88 = vmatpush.msra.mxu1 %v67_v6  ;;  %vm33_vm1 = vcmask 408576   ;;  %vm74_vm2 = vcmask 523264  }
   0x8   :  { %53 = vmatpush.msra.mxu0 %v25_v5  ;;  %v23_v9 = vld [vmem:[%s261_s1 + $0x8] sm:$0xff]  ;;  %v65_v10 = vld [vmem:[%s263_s3 + $0x18] sm:$0xff]  ;;  %v22_v11 = vld [vmem:[%s261_s1] sm:$0xff]  ;;  %vm117_vm6 = vcmask 203776  }
   0x9   :  { %89 = vmatpush.msra.mxu1 %v66_v8  ;;  %v21_v12 = vld [vmem:[%s260_s0] sm:$0xff]  ;;  %v64_v13 = vld [vmem:[%s263_s3 + $0x10] sm:$0xff]  ;;  %v63_v14 = vld [vmem:[%s263_s3 + $0x8] sm:$0xff] }
   0xa   :  { %54 = vmatpush.msra.mxu0 %v24_v7  ;;  %v62_v15 = vld [vmem:[%s263_s3] sm:$0xff] }
   0xb   :  { %90 = vmatpush.msra.mxu1 %v65_v10  ;;  %v140_v16 = vld [vmem:[%s262_s2] ss:$0 sm:$0xff]  ;;  %s172_s2 = smov [#allocation2]  }
   0xc   :  { %55 = vmatpush.msra.mxu0 %v23_v9  ;;  %v141_v20 = vld [vmem:[%s264_s4] ss:$0 sm:$0xff]  ;;  %s124_s3 = sshll.u32 %s172_s2, 4  ;;  %s126_s4 = sshll.u32 %s265_s5, 4  ;;  %s125_s3 = int_to_ptr.vmem [resolvable:$true] %s124_s3  ;;  %s127_s4 = int_to_ptr.hbm [resolvable:$true] %s126_s4 }
   0xd   :  { %91 = vmatpush.msra.mxu1 %v64_v13 }
   0xe   :  { %56 = vmatpush.msra.mxu0 %v22_v11 }
   0xf   :  { %136 = vmatmul.msk.f32.vlgmr.msra.gmra.mxu0 %vm33_vm1, %v21_v12  ;;  %92 = vmatpush.msra.mxu1 %v63_v14 }
  0x11   :  { %93 = vmatpush.msra.mxu1 %v62_v15 }
  0x8c   :  { %v58_v17 = vpop.f32.mrf.mxu0 }
  0x8d   :  { %v59_v18 = vadd.f32 %v140_v16, %v58_v17 }
  0x8f   :  { %v61_v19 = vmax.f32 %v59_v18, 0.0 }
  0x91   :  { %137 = vmatmul.msk.f32.vlgmr.msra.gmra.mxu1 %vm74_vm2, %v61_v19 }
 0x10e   :  { %v95_v21 = vpop.f32.mrf.mxu1 }
 0x10f   :  { %v96_v22 = vadd.f32 %v141_v20, %v95_v21 }
 0x111   :  { %v138_v23 = vmul.f32 -1.442695, %v96_v22 }
 0x113   :  { %142 = vpow2.f32 %v138_v23 }
 0x119   :  { %v143_v24 = vpop.eup %142 }
 0x11a   :  { %v101_v25 = vadd.f32 1.0, %v143_v24 }
 0x11c   :  { %144 = vrcp.f32 %v101_v25  ;;  %v113_v29 = vand.u32 2147483648, %v101_v25  ;;  %v111_v31 = vand.u32 2147483647, %v101_v25  ;;  %vm107_vm4 = vweird.f32 %v101_v25 }
 0x11e   :  { %v114_v33 = vor.u32 1.1754944e-38, %v113_v29  ;;  %vm112_vm7 = vcmp.eq.f32.partialorder %v111_v31, 8.507059e+37 }
 0x122   :  { %v145_v26 = vpop.eup %144 }
 0x123   :  { %v103_v27 = vmul.f32 %v145_v26, %v101_v25  ;;  %vm108_vm3 = vweird.f32 %v145_v26 }
 0x124   :  { %vm109_vm5 = vmor %vm107_vm4, %vm108_vm3 }
 0x125   :  { %v104_v28 = vsub.f32 1.0, %v103_v27 }
 0x127   :  { %v105_v30 = vmul.f32 %v145_v26, %v104_v28 }
 0x129   :  { %v106_v32 = vadd.f32 %v145_v26, %v105_v30 }
 0x12b   :  { %v110_v34 = vsel %vm109_vm5, %v145_v26, %v106_v32 }
 0x12c   :  { %v115_v35 = vsel %vm112_vm7, %v114_v33, %v110_v34 }
 0x12d   :  { %118 = vst.msk [vmem:[#allocation2] sm:$0xff] %vm117_vm6, %v115_v35 }
 0x12e   :  { %129 = dma.vmem_to_hbm [thread:$0]  %s125_s3, 128, %s127_s4, [#allocation3]  }
 0x12f   :  { %170 = dma.done.wait [#allocation3], 128  }
 0x130   :  { %171 = vsyncadd [#allocation3], 4294967168 }
 0x131   :  { %134 = vsyncpa [#allocation3], 1 }

</bundles_post_ra>
